<compile_context>
chip_gen: v5e
topology: v5e:2x2
jax: 0.10.0
libtpu: 0.0.40
codegen_flags: <defaults>
</compile_context>

<pallas_src>
import functools

import jax
import jax.numpy as jnp
from jax import lax
from jax.experimental import pallas as pl
from jax.experimental.pallas import tpu as pltpu


_FUSED_MAX_N = 256          # single-tile (fully fused QKV matmul) path threshold
_SCORE_TILE_BUDGET = 16 * 1024 * 1024   # f32 bytes allowed for the (H, TQ, N_pad) scores


def _round_up(x, m):
    return (x + m - 1) // m * m


def _attend(q, k, v, *, heads, head_dim, n_valid, mxu_dtype):
    """Batched-over-heads attention.  q: (TQ, dim), k/v: (NK, dim) -> (TQ, dim)."""
    tq = q.shape[0]
    nk = k.shape[0]
    q3 = q.reshape(tq, heads, head_dim).astype(mxu_dtype)
    k3 = k.reshape(nk, heads, head_dim).astype(mxu_dtype)
    v3 = v.reshape(nk, heads, head_dim).astype(mxu_dtype)

    # Scores for all heads in one batched contraction (no per-head lane slices,
    # no kh.T transpose: last dims contract directly).
    s = jnp.einsum('qhd,khd->hqk', q3, k3,
                   preferred_element_type=jnp.float32)          # (H, TQ, NK) f32

    if n_valid < nk:  # static: mask padded key columns (same mask_value as PyTorch)
        kid = lax.broadcasted_iota(jnp.int32, s.shape, 2)
        s = jnp.where(kid < n_valid, s, -jnp.finfo(jnp.float32).max)

    m = jnp.max(s, axis=-1, keepdims=True)
    e = jnp.exp(s - m)
    denom = jnp.sum(e, axis=-1, keepdims=True)
    p = (e * pl.reciprocal(denom, approx=True)).astype(mxu_dtype)  # softmax over keys

    pv = jnp.einsum('hqk,khd->qhd', p, v3,
                    preferred_element_type=jnp.float32)         # (TQ, H, hd) f32
    return pv.reshape(tq, heads * head_dim)                     # 'b h n d -> b n (h d)'


def _mha_fused_kernel(x_ref, wqkv_ref, wo_ref, bo_ref, o_ref,
                      *, heads, head_dim, dim, mxu_dtype):
    # x_ref:    (1, N, D_in)    whole (short) sequence for one batch element
    # wqkv_ref: (D_in, 3*dim)   [Wq | Wk*scale | Wv] in (in, out) layout
    # wo_ref:   (dim, out_dim)
    # bo_ref:   (1, out_dim)
    # o_ref:    (1, N, out_dim)
    x = x_ref[0].astype(mxu_dtype)                              # (N, D_in)
    qkv = jnp.dot(x, wqkv_ref[...].astype(mxu_dtype),
                  preferred_element_type=jnp.float32)           # one wide MXU matmul
    q = qkv[:, :dim]
    k = qkv[:, dim:2 * dim]
    v = qkv[:, 2 * dim:]

    out = _attend(q, k, v, heads=heads, head_dim=head_dim,
                  n_valid=k.shape[0], mxu_dtype=mxu_dtype)      # (N, dim)
    y = jnp.dot(out.astype(mxu_dtype), wo_ref[...].astype(mxu_dtype),
                preferred_element_type=jnp.float32) + bo_ref[...]
    o_ref[0] = y.astype(o_ref.dtype)


def _mha_tiled_kernel(xq_ref, xkv_ref, wqkv_ref, wo_ref, bo_ref, o_ref, kv_ref,
                      *, heads, head_dim, n_valid, mxu_dtype):
    # xq_ref:   (1, TQ, D_in)     query rows of the current tile
    # xkv_ref:  (1, N_pad, D_in)  full (padded) sequence; DMA'd only when b changes
    # wqkv_ref: (3, D_in, dim)    [Wq, Wk*scale, Wv] stacked (no lane slicing needed)
    # wo_ref:   (dim, out_dim)
    # bo_ref:   (1, out_dim)
    # o_ref:    (1, TQ, out_dim)
    # kv_ref:   (2, N_pad, dim)   VMEM scratch, persists across the qi axis
    qi = pl.program_id(1)

    @pl.when(qi == 0)
    def _():  # project K/V once per batch element, reuse for every query tile
        xkv = xkv_ref[0].astype(mxu_dtype)                      # (N_pad, D_in)
        k = jnp.dot(xkv, wqkv_ref[1].astype(mxu_dtype),
                    preferred_element_type=jnp.float32)
        v = jnp.dot(xkv, wqkv_ref[2].astype(mxu_dtype),
                    preferred_element_type=jnp.float32)
        kv_ref[0] = k.astype(kv_ref.dtype)
        kv_ref[1] = v.astype(kv_ref.dtype)

    xq = xq_ref[0].astype(mxu_dtype)                            # (TQ, D_in)
    q = jnp.dot(xq, wqkv_ref[0].astype(mxu_dtype),
                preferred_element_type=jnp.float32)             # (TQ, dim)
    k = kv_ref[0]                                               # (N_pad, dim)
    v = kv_ref[1]

    out = _attend(q, k, v, heads=heads, head_dim=head_dim,
                  n_valid=n_valid, mxu_dtype=mxu_dtype)         # (TQ, dim)
    y = jnp.dot(out.astype(mxu_dtype), wo_ref[...].astype(mxu_dtype),
                preferred_element_type=jnp.float32) + bo_ref[...]
    o_ref[0] = y.astype(o_ref.dtype)


def multihead_attention(x, wq, wk, wv, wo, bo, *, heads):
    """x: (B, N, D_in); wq/wk/wv: (D_in, dim); wo: (dim, out_dim); bo: (out_dim,).

    Weights use the transposed (in, out) layout of nn.Linear.weight.
    """
    B, N, D_in = x.shape
    dim = wq.shape[1]
    out_dim = wo.shape[1]
    assert dim % heads == 0
    head_dim = dim // heads
    scale = float(head_dim) ** -0.5

    # bf16 models get bf16 MXU operands (f32 accumulation); f32 models stay f32.
    mxu_dtype = jnp.bfloat16 if x.dtype == jnp.bfloat16 else jnp.float32

    wo_ = wo.astype(x.dtype)
    bo2 = bo.reshape(1, out_dim).astype(x.dtype)

    cparams = dict(vmem_limit_bytes=64 * 1024 * 1024)

    if N <= _FUSED_MAX_N:
        # ---- short sequences: one tile, one fused QKV matmul, single x input ----
        wqkv = jnp.concatenate([wq, wk * scale, wv], axis=1).astype(x.dtype)  # (D_in, 3*dim)
        kernel = functools.partial(_mha_fused_kernel, heads=heads,
                                   head_dim=head_dim, dim=dim, mxu_dtype=mxu_dtype)
        return pl.pallas_call(
            kernel,
            out_shape=jax.ShapeDtypeStruct((B, N, out_dim), x.dtype),
            grid_spec=pltpu.PrefetchScalarGridSpec(
                num_scalar_prefetch=0,
                grid=(B,),
                in_specs=[
                    pl.BlockSpec((1, N, D_in), lambda b: (b, 0, 0)),     # x (q=k=v source)
                    pl.BlockSpec((D_in, 3 * dim), lambda b: (0, 0)),     # fused QKV weight
                    pl.BlockSpec((dim, out_dim), lambda b: (0, 0)),      # out weight
                    pl.BlockSpec((1, out_dim), lambda b: (0, 0)),        # out bias
                ],
                out_specs=pl.BlockSpec((1, N, out_dim), lambda b: (b, 0, 0)),
            ),
            compiler_params=pltpu.CompilerParams(
                dimension_semantics=("parallel",), **cparams),
        )(x, wqkv, wo_, bo2)

    # ---- long sequences: query-tiled path with per-batch K/V VMEM scratch ----
    tq = 256                                     # fill the 256x256 MXU on v6e/v7x
    if heads * tq * _round_up(N, tq) * 4 > _SCORE_TILE_BUDGET:
        tq = 128                                 # bound live VMEM (v7x) / v5e MXU size
    n_pad = _round_up(N, tq)
    num_q = n_pad // tq
    x_pad = jnp.pad(x, ((0, 0), (0, n_pad - N), (0, 0))) if n_pad != N else x

    wqkv3 = jnp.stack([wq, wk * scale, wv], axis=0).astype(x.dtype)   # (3, D_in, dim)

    kernel = functools.partial(_mha_tiled_kernel, heads=heads, head_dim=head_dim,
                               n_valid=N, mxu_dtype=mxu_dtype)
    out = pl.pallas_call(
        kernel,
        out_shape=jax.ShapeDtypeStruct((B, n_pad, out_dim), x.dtype),
        grid_spec=pltpu.PrefetchScalarGridSpec(
            num_scalar_prefetch=0,
            grid=(B, num_q),
            in_specs=[
                pl.BlockSpec((1, tq, D_in), lambda b, qi: (b, qi, 0)),    # query tile
                pl.BlockSpec((1, n_pad, D_in), lambda b, qi: (b, 0, 0)),  # full seq (K/V src)
                pl.BlockSpec((3, D_in, dim), lambda b, qi: (0, 0, 0)),    # stacked Q/K/V weights
                pl.BlockSpec((dim, out_dim), lambda b, qi: (0, 0)),       # out weight
                pl.BlockSpec((1, out_dim), lambda b, qi: (0, 0)),         # out bias
            ],
            out_specs=pl.BlockSpec((1, tq, out_dim), lambda b, qi: (b, qi, 0)),
            scratch_shapes=[pltpu.VMEM((2, n_pad, dim), mxu_dtype)],      # cached K,V
        ),
        compiler_params=pltpu.CompilerParams(
            dimension_semantics=("parallel", "arbitrary"), **cparams),
    )(x_pad, x_pad, wqkv3, wo_, bo2)
    return out[:, :N, :]


def _reference(x, wq, wk, wv, wo, bo, *, heads):
    B, N, D = x.shape
    dim = wq.shape[1]
    hd = dim // heads
    scale = float(hd) ** -0.5
    q = x @ wq
    k = x @ wk
    v = x @ wv

    def split(t):
        return t.reshape(B, N, heads, hd).transpose(0, 2, 1, 3)   # b h n d

    q, k, v = split(q), split(k), split(v)
    k = k * scale
    att = jnp.einsum('bhnd,bhmd->bhnm', q, k)
    att = jax.nn.softmax(att, axis=-1)
    out = jnp.einsum('bhnm,bhmd->bhnd', att, v)
    out = out.transpose(0, 2, 1, 3).reshape(B, N, dim)
    return out @ wo + bo


if __name__ == "__main__":
    # Small shapes consistent with the module: in_dim=32, heads=4, batch=2, seq=8.
    # proj_dim/out_dim default to in_dim; use_bias=False -> Q/K/V have no bias;
    # attention_dropout=0.0 and ff_dropout=0.0 -> dropouts are identity.
    B, N, IN_DIM, HEADS = 2, 8, 32, 4
    DIM = IN_DIM
    OUT_DIM = IN_DIM

    key = jax.random.PRNGKey(0)
    kx, kq, kk, kv, kwo, kbo, kx2 = jax.random.split(key, 7)

    x = jax.random.normal(kx, (B, N, IN_DIM), dtype=jnp.float32)
    # nn.Linear weight is (out, in); we store the transposed (in, out) layout.
    wq = jax.random.normal(kq, (IN_DIM, DIM), dtype=jnp.float32) * 0.1
    wk = jax.random.normal(kk, (IN_DIM, DIM), dtype=jnp.float32) * 0.1
    wv = jax.random.normal(kv, (IN_DIM, DIM), dtype=jnp.float32) * 0.1
    wo = jax.random.normal(kwo, (DIM, OUT_DIM), dtype=jnp.float32) * 0.1
    bo = jax.random.normal(kbo, (OUT_DIM,), dtype=jnp.float32) * 0.1

    # --- fused (short-sequence) path ---
    out = multihead_attention(x, wq, wk, wv, wo, bo, heads=HEADS)
    out = jax.block_until_ready(out)
    ref = _reference(x, wq, wk, wv, wo, bo, heads=HEADS)
    assert out.shape == (B, N, OUT_DIM)
    # Tolerance loosened slightly vs exact f32 because the softmax normalization
    # uses the EUP approximate reciprocal (relative error ~1e-4).
    assert jnp.allclose(out, ref, atol=2e-3, rtol=2e-3), "fused path mismatch vs reference"

    # --- tiled (long-sequence) path: exercises query tiling, padding + key mask,
    #     and the per-batch K/V VMEM scratch reuse ---
    B2, N2 = 1, 300
    x2 = jax.random.normal(kx2, (B2, N2, IN_DIM), dtype=jnp.float32)
    out2 = multihead_attention(x2, wq, wk, wv, wo, bo, heads=HEADS)
    out2 = jax.block_until_ready(out2)
    ref2 = _reference(x2, wq, wk, wv, wo, bo, heads=HEADS)
    assert out2.shape == (B2, N2, OUT_DIM)
    assert jnp.allclose(out2, ref2, atol=2e-3, rtol=2e-3), "tiled path mismatch vs reference"

    print("KERNEL_OK")
</pallas_src>

<mosaic_0001>
module attributes {stable_mosaic.version = 11 : i64} {
  func.func @_mha_fused_kernel(%arg0: i32, %arg1: memref<1x8x32xf32, #tpu.memory_space<vmem>>, %arg2: memref<32x96xf32, #tpu.memory_space<vmem>>, %arg3: memref<32x32xf32, #tpu.memory_space<vmem>>, %arg4: memref<1x32xf32, #tpu.memory_space<vmem>>, %arg5: memref<1x8x32xf32, #tpu.memory_space<vmem>>) attributes {dimension_semantics = [#tpu.dimension_semantics<parallel>], iteration_bounds = array<i64: 2>, scalar_prefetch = 0 : i64, scratch_operands = 0 : i64, tpu.core_type = #tpu.core_type<tc>, window_params = [{transform_indices = @transform_0, window_bounds = array<i64: 1, 8, 32>}, {pipeline_mode = #tpu.pipeline_mode<synchronous>, transform_indices = @transform_1, window_bounds = array<i64: 32, 96>}, {pipeline_mode = #tpu.pipeline_mode<synchronous>, transform_indices = @transform_2, window_bounds = array<i64: 32, 32>}, {pipeline_mode = #tpu.pipeline_mode<synchronous>, transform_indices = @transform_3, window_bounds = array<i64: 1, 32>}, {transform_indices = @transform_4, window_bounds = array<i64: 1, 8, 32>}]} {
    %c0 = arith.constant 0 : index
    %c0_0 = arith.constant 0 : index
    %c0_1 = arith.constant 0 : index
    %0 = vector.load %arg1[%c0, %c0_0, %c0_1] : memref<1x8x32xf32, #tpu.memory_space<vmem>>, vector<1x8x32xf32>
    %1 = vector.shape_cast %0 : vector<1x8x32xf32> to vector<8x32xf32>
    %c0_2 = arith.constant 0 : index
    %c0_3 = arith.constant 0 : index
    %2 = vector.load %arg2[%c0_2, %c0_3] : memref<32x96xf32, #tpu.memory_space<vmem>>, vector<32x96xf32>
    %cst = arith.constant dense<0.000000e+00> : vector<8x96xf32>
    %3 = tpu.matmul %1, %2, %cst {dimension_numbers = #tpu.dot_dimension_numbers<[1], [0], [0], [1], [0, 0, 1, 1], [], []>} : vector<8x32xf32>, vector<32x96xf32>, vector<8x96xf32> -> vector<8x96xf32>
    %4 = vector.extract_strided_slice %3 {offsets = [0, 0], sizes = [8, 32], strides = [1, 1]} : vector<8x96xf32> to vector<8x32xf32>
    %5 = vector.extract_strided_slice %3 {offsets = [0, 32], sizes = [8, 32], strides = [1, 1]} : vector<8x96xf32> to vector<8x32xf32>
    %6 = vector.extract_strided_slice %3 {offsets = [0, 64], sizes = [8, 32], strides = [1, 1]} : vector<8x96xf32> to vector<8x32xf32>
    %7 = vector.shape_cast %4 : vector<8x32xf32> to vector<8x4x8xf32>
    %8 = vector.shape_cast %5 : vector<8x32xf32> to vector<8x4x8xf32>
    %9 = vector.shape_cast %6 : vector<8x32xf32> to vector<8x4x8xf32>
    "tpu.trace_start"() <{level = 10 : i32, message = "qhd,khd->hqk"}> : () -> ()
    %cst_4 = arith.constant dense<0.000000e+00> : vector<4x8x8xf32>
    %10 = tpu.matmul %7, %8, %cst_4 {dimension_numbers = #tpu.dot_dimension_numbers<[2], [2], [0], [0], [0, 1, 0, 0, 1, 0], [1], [1]>} : vector<8x4x8xf32>, vector<8x4x8xf32>, vector<4x8x8xf32> -> vector<4x8x8xf32>
    "tpu.trace_stop"() : () -> ()
    %cst_5 = arith.constant dense<0xFF800000> : vector<4x8xf32>
    %11 = vector.multi_reduction <maximumf>, %10, %cst_5 [2] : vector<4x8x8xf32> to vector<4x8xf32>
    %12 = vector.shape_cast %11 : vector<4x8xf32> to vector<4x8x1xf32>
    %13 = vector.broadcast %12 : vector<4x8x1xf32> to vector<4x8x8xf32>
    %14 = arith.subf %10, %13 : vector<4x8x8xf32>
    %15 = math.exp %14 : vector<4x8x8xf32>
    %cst_6 = arith.constant dense<0.000000e+00> : vector<4x8xf32>
    %16 = vector.multi_reduction <add>, %15, %cst_6 [2] : vector<4x8x8xf32> to vector<4x8xf32>
    %17 = vector.shape_cast %16 : vector<4x8xf32> to vector<4x8x1xf32>
    %18 = tpu.reciprocal %17 {approx = true} : vector<4x8x1xf32> -> vector<4x8x1xf32>
    %19 = vector.broadcast %18 : vector<4x8x1xf32> to vector<4x8x8xf32>
    %20 = arith.mulf %15, %19 : vector<4x8x8xf32>
    "tpu.trace_start"() <{level = 10 : i32, message = "hqk,khd->qhd"}> : () -> ()
    %cst_7 = arith.constant dense<0.000000e+00> : vector<4x8x8xf32>
    %21 = tpu.matmul %9, %20, %cst_7 {dimension_numbers = #tpu.dot_dimension_numbers<[0], [2], [2], [1], [0, 1, 0, 2, 1, 1], [1], [0]>} : vector<8x4x8xf32>, vector<4x8x8xf32>, vector<4x8x8xf32> -> vector<4x8x8xf32>
    %22 = tpu.transpose %21, [2, 0, 1] : vector<4x8x8xf32> -> vector<8x4x8xf32>
    "tpu.trace_stop"() : () -> ()
    %23 = vector.shape_cast %22 : vector<8x4x8xf32> to vector<8x32xf32>
    %c0_8 = arith.constant 0 : index
    %c0_9 = arith.constant 0 : index
    %24 = vector.load %arg3[%c0_8, %c0_9] : memref<32x32xf32, #tpu.memory_space<vmem>>, vector<32x32xf32>
    %cst_10 = arith.constant dense<0.000000e+00> : vector<8x32xf32>
    %25 = tpu.matmul %23, %24, %cst_10 {dimension_numbers = #tpu.dot_dimension_numbers<[1], [0], [0], [1], [0, 0, 1, 1], [], []>} : vector<8x32xf32>, vector<32x32xf32>, vector<8x32xf32> -> vector<8x32xf32>
    %c0_11 = arith.constant 0 : index
    %c0_12 = arith.constant 0 : index
    %26 = vector.load %arg4[%c0_11, %c0_12] : memref<1x32xf32, #tpu.memory_space<vmem>>, vector<1x32xf32>
    %27 = vector.broadcast %26 : vector<1x32xf32> to vector<8x32xf32>
    %28 = arith.addf %25, %27 : vector<8x32xf32>
    %c0_13 = arith.constant 0 : index
    %c0_14 = arith.constant 0 : index
    %c0_15 = arith.constant 0 : index
    %29 = vector.load %arg5[%c0_13, %c0_14, %c0_15] : memref<1x8x32xf32, #tpu.memory_space<vmem>>, vector<1x8x32xf32>
    %30 = vector.shape_cast %29 : vector<1x8x32xf32> to vector<8x32xf32>
    %31 = vector.shape_cast %28 : vector<8x32xf32> to vector<1x8x32xf32>
    tpu.vector_store %arg5[%c0_13, %c0_14, %c0_15], %31 {strides = array<i32>} : memref<1x8x32xf32, #tpu.memory_space<vmem>>, vector<1x8x32xf32>,
    return
  }
  func.func @transform_0(%arg0: i32) -> (i32, i32, i32) {
    %c0_i32 = arith.constant 0 : i32
    %c0_i32_0 = arith.constant 0 : i32
    %c0_i32_1 = arith.constant 0 : i32
    return %arg0, %c0_i32, %c0_i32_0 : i32, i32, i32
  }
  func.func @transform_1(%arg0: i32) -> (i32, i32) {
    %c0_i32 = arith.constant 0 : i32
    %c0_i32_0 = arith.constant 0 : i32
    %c0_i32_1 = arith.constant 0 : i32
    return %c0_i32, %c0_i32_0 : i32, i32
  }
  func.func @transform_2(%arg0: i32) -> (i32, i32) {
    %c0_i32 = arith.constant 0 : i32
    %c0_i32_0 = arith.constant 0 : i32
    %c0_i32_1 = arith.constant 0 : i32
    return %c0_i32, %c0_i32_0 : i32, i32
  }
  func.func @transform_3(%arg0: i32) -> (i32, i32) {
    %c0_i32 = arith.constant 0 : i32
    %c0_i32_0 = arith.constant 0 : i32
    %c0_i32_1 = arith.constant 0 : i32
    return %c0_i32, %c0_i32_0 : i32, i32
  }
  func.func @transform_4(%arg0: i32) -> (i32, i32, i32) {
    %c0_i32 = arith.constant 0 : i32
    %c0_i32_0 = arith.constant 0 : i32
    %c0_i32_1 = arith.constant 0 : i32
    return %arg0, %c0_i32, %c0_i32_0 : i32, i32, i32
  }
}

</mosaic_0001>

<bundles_post_ra>
// kernel: tpu_custom_call.1
= control target key start
LH: loop header
LB: loop body
LE: loop exit
PB: predicated region body
PF: predicated region fallthrough
CT: control target
= control target key end

     0   :  { %9 = vsyncpa [#allocation3], 0  ;;  %s1734_s0 = inlined_call_operand.hbm [shape: f32[2,8,32], index: 0, kind: input, shape index: {}]   ;;  %s1735_s1 = inlined_call_operand.hbm [shape: f32[32,96], index: 1, kind: input, shape index: {}]   ;;  %s1736_s2 = inlined_call_operand.hbm [shape: f32[32,32], index: 2, kind: input, shape index: {}]   ;;  %s1737_s3 = inlined_call_operand.vmem [shape: f32[1,32], index: 3, kind: input, shape index: {}]   ;;  %s1738_s4 = inlined_call_operand.hbm [shape: f32[2,8,32], index: 4, kind: output, shape index: {}]  }
   0x1   :  { %11 = vsyncpa [#allocation3 + $0x1], 0 }
   0x2   :  { %12 = vsyncpa [#allocation6], 0 }
   0x3   :  { %13 = vsyncpa [#allocation4], 0 }
   0x4   :  { %15 = vsyncpa [#allocation4 + $0x1], 0  ;;  %s1534_s15 = smov 0   ;;  %s1536_s16 = smov 0  }
   0x5   :  { %s1538_s17 = smov 0   ;;  %s1540_s18 = smov 0  }
   0x6 LB: > { %s152_s21 = sshll.u32 %s1735_s1, 4  ;;  %s1558_s22 = sadd.s32 4294967295, %s1493_s18   ;;  %s1493_s18 = sphi %s1540_s18, %s1749_s18   ;;  %s1489_s17 = sphi %s1538_s17, %s1748_s17   ;;  %s1485_s16 = sphi %s1536_s16, %s1747_s16   ;;  %s1481_s15 = sphi %s1534_s15, %s1746_s15   ;;  %s153_s21 = int_to_ptr.hbm [resolvable:$true] %s152_s21 }
   0x7   : > { %p1195_p0 = scmp.ge.s32.totalorder %s1493_s18, 1  ;;  %p42_p1 = scmp.eq.s32.totalorder %s1558_s22, 0 }
   0x8   : > { %p141_p2 = scmp.lt.s32.totalorder %s1493_s18, 3  ;;  %s1495_s24 = smov [#allocation5]  }
   0x9   : > { %s154_s25 = sshll.u32 %s1495_s24, 4  ;;  %s166_s28 = sshll.u32 %s1736_s2, 4  ;;  %s155_s25 = int_to_ptr.vmem [resolvable:$true] %s154_s25  ;;  %s167_s28 = int_to_ptr.hbm [resolvable:$true] %s166_s28 }
   0xa   : > { %p1563_p3 = pnand %p1195_p0, %p141_p2  ;;  %s1496_s29 = smov [#allocation7]  }
   0xb   : > { %s168_s30 = sshll.u32 %s1496_s29, 4  ;;  %s1497_s5 = smov 128   ;;  %s169_s30 = int_to_ptr.vmem [resolvable:$true] %s168_s30 }
   0xc   : > { %p1236_p4 = pneg %p1563_p3  ;;  %s1498_s6 = smov 8  }
   0xd   : > { %s1194_s7 = sadd.s32 4294967294, %s1493_s18   ;;  %s1577_s8 = sadd.s32 1, %s1493_s18  }
   0xe   : > { %p1237_p6 = pnand %p1236_p4, %p42_p1  ;;  %s25_s9 = ssub.s32 %s1493_s18, %s1577_s8 }
   0xf   : > { %s28_s10 = sadd.s32 1, %s1489_s17  ;;  %p26_p7 = scmp.eq.s32.totalorder %s25_s9, 0 }
  0x10   : > { %1239 = dma.hbm_to_vmem [thread:$0]  (!%p1237_p6), %s153_s21, 512, %s155_s25, [#allocation6], %s1497_s5, %s1497_s5, %s1498_s6  }
  0x11   : > { %1242 = dma.hbm_to_vmem [thread:$0]  (!%p1237_p6), %s167_s28, 512, %s169_s30, [#allocation6], %s1497_s5, %s1497_s5, %s1498_s6  }
  0x12   : > { %p35_p8 = scmp.ne.s32.totalorder %s1489_s17, %s1485_s16  ;;  %p36_p9 = scmp.eq.s32.totalorder %s1493_s18, 0 }
  0x13   : > { %p41_p10 = scmp.ne.s32.totalorder %s1485_s16, %s1481_s15  ;;  %p128_p13 = scmp.eq.s32.totalorder %s1558_s22, 1 }
  0x14   : > { %s1588_s11 = scalar_select %p26_p7, %s1489_s17, %s28_s10  }
  0x15   : > { %p1590_p11 = por %p36_p9, %p35_p8  ;;  %p1596_p12 = por %p42_p1, %p41_p10 }
  0x16   : > { %p134_p0 = scmp.eq.s32.totalorder %s1194_s7, 1  ;;  %p1253_p2 = scmp.lt.s32.totalorder %s1493_s18, 2 }
  0x17   : > { %s185_s14 = sand.u32 1, %s1489_s17   ;;  %p1603_p4 = por %p128_p13, %p35_p8 }
  0x18   : > { %p1607_p6 = por %p134_p0, %p41_p10  ;;  %s1199_s21 = sshll.u32 %s185_s14, 3 }
  0x19   : > { %s1200_s24 = sshll.u32 %s1493_s18, 3  ;;  %s189_s28 = scalar_lea.vmem [#allocation2], %s1199_s21 }
  0x1a   : > { %s193_s27 = scalar_lea.hbm %s1734_s0, %s1200_s24  ;;  %s197_s29 = sshll.u32 %s189_s28, 4  ;;  %s198_s29 = int_to_ptr.vmem [resolvable:$true] %s197_s29 }
  0x1b   : > { %s195_s30 = sshll.u32 %s193_s27, 4  ;;  %p1617_p7 = pnand %p1253_p2, %p1590_p11  ;;  %s196_s30 = int_to_ptr.hbm [resolvable:$true] %s195_s30 }
  0x1c   : > { %s186_s6 = scalar_lea.sflag [#allocation3], %s185_s14  ;;  %s1393_s7 = sshra.s32 %s196_s30, 4  ;;  %s1394_s7 = int_to_ptr.hbm [resolvable:$true] %s1393_s7 }
  0x1d   : > { %s1395_s9 = scalar_lea.hbm %s1394_s7, 8  ;;  %p1397_p9 = pneg %p1617_p7 }
  0x1e   : > { %p1396_p8 = scmp.ne.s32.totalorder %s1394_s7, %s1395_s9  ;;  %s1400_s24 = scalar_lea.hbm %s1734_s0, 16 }
  0x1f   : > { %p1401_p11 = scmp.lt.s32.totalorder %s1394_s7, %s1734_s0  ;;  %p1402_p0 = scmp.lt.s32.totalorder %s1400_s24, %s1395_s9 }
  0x20   : > { %p1398_p10 = pnand %p1397_p9, %p1396_p8 }
  0x21   : > { %p1403_p2 = por %p1402_p0, %p1401_p11 }
  0x22   : > { %p1399_p13 = pneg %p1398_p10 }
  0x24   : > { %p1404_p5 = pnand %p1403_p2, %p1399_p13 }
  0x26   : > { %1407 = shalt.err (!%p1404_p5)
}
  0x27   : > { %1246 = dma.hbm_to_vmem [thread:$0]  (!%p1617_p7), %s196_s30, 128, %s198_s29, %s186_s6  }
  0x28   : > { %206 = sbr.rel (%p1563_p3) target bundleno = 1630 (0x65e), region = 36  ;;  %s1634_s14 = sand.u32 (!%p1563_p3), 1, %s1485_s16  }
  0x29   : > { %s1202_s26 = sshll.u32 (!%p1563_p3), %s1634_s14, 3  ;;  %s209_s27 = scalar_lea.sflag (!%p1563_p3), [#allocation3], %s1634_s14 }
  0x2a   : > { %s212_s28 = scalar_lea.vmem (!%p1563_p3), [#allocation2], %s1202_s26 }
  0x2d   : > { %1468 = dma.done.wait (%p1596_p12), %s209_s27, 128  }
  0x2e   : > { %1470 = vsyncadd (%p1596_p12), %s209_s27, 4294967168 }
  0x2f   : > { %1472 = dma.done.wait (%p42_p1), [#allocation6], 1024  }
  0x30   : > { %1474 = vsyncadd (%p42_p1), [#allocation6], 4294966272  ;;  %v252_v0 = vld [vmem:[#allocation5 + $0x18] sm:$0xff]  ;;  %v251_v1 = vld [vmem:[#allocation5 + $0x10] sm:$0xff]  ;;  %vm253_vm0 = vcmask 261120   ;;  %s1499_s23 = smov 104  }
  0x31   : > { %269 = vmatpush.msra.mxu0 %v252_v0  ;;  %v250_v2 = vld [vmem:[#allocation5 + $0x8] sm:$0xff]  ;;  %v249_v3 = vld [vmem:[#allocation5] sm:$0xff]  ;;  %v248_v4 = vld [vmem:[%s212_s28] sm:$0xff]  ;;  %s1500_s13 = smov 120   ;;  %s1501_s29 = smov 112   ;;  %vm424_vm1 = vcmask 64512  }
  0x32   : > { %s1502_s30 = smov 96   ;;  %s1503_s5 = smov 64   ;;  %vm930_vm2 = vcmask 1047556   ;;  %vm1053_vm3 = vcmask 130048   ;;  %vm1055_vm4 = vcmask 195584  }
  0x33   : > { %270 = vmatpush.msra.mxu0 %v251_v1  ;;  %s1506_s6 = smov 24   ;;  %s1507_s7 = smov 16  }
  0x34   : > { %s1508_s9 = smov 8   ;;  %s1221_s10 = sshll.u32 %s1558_s22, 3 }
  0x35   : > { %271 = vmatpush.msra.mxu0 %v250_v2  ;;  %s1100_s25 = scalar_lea.hbm %s1738_s4, %s1221_s10  ;;  %s247_s28 = scalar_lea.vmem [#allocation8], %s1202_s26 }
  0x36   : > { %s1090_s22 = scalar_lea.sflag [#allocation4], %s1634_s14  ;;  %s1443_s26 = scalar_lea.hbm %s1738_s4, 16 }
  0x37   : > { %272 = vmatpush.msra.mxu0 %v249_v3 }
  0x38   : > { %1206 = vmatmul.msk.f32.vlgmr.msra.gmra.mxu0 %vm253_vm0, %v248_v4 }
  0xb5   : > { %v274_v5 = vpop.f32.mrf.mxu0 }
  0xb6   : > { %282 = vrot.lane.b32.xlu1 %v274_v5, %s1499_s23  ;;  %278 = vrot.lane.b32.xlu0 %v274_v5, %s1500_s13  ;;  %s1102_s23 = sshll.u32 %s247_s28, 4  ;;  %s1104_s13 = sshll.u32 %s1100_s25, 4  ;;  %s1103_s23 = int_to_ptr.vmem [resolvable:$true] %s1102_s23  ;;  %s1105_s13 = int_to_ptr.hbm [resolvable:$true] %s1104_s13 }
  0xbe   : > { %280 = vrot.lane.b32.xlu0 %v274_v5, %s1501_s29  ;;  %s1437_s29 = sshra.s32 %s1105_s13, 4  ;;  %s1438_s29 = int_to_ptr.hbm [resolvable:$true] %s1437_s29 }
  0xbf   : > { %p1444_p12 = scmp.lt.s32.totalorder %s1438_s29, %s1738_s4 }
 0x128   : > { %v279_v6 = vpop.permute.xlu0 %278  ;;  %v283_v9 = vpop.permute.xlu1 %282 }
 0x129   : > { %v1304_v7 = vpack.i.bf16 %v274_v5, %v279_v6 }
 0x12b   : > { %1305 = vrot.lane.b32.xlu1 %v1304_v7, %s1502_s30 }
 0x130   : > { %v281_v8 = vpop.permute.xlu0 %280 }
 0x131   : > { %288 = vrot.lane.b32.xlu2 %v281_v8, %s1502_s30 }
 0x139   : > { %290 = vrot.lane.b32.xlu2 %v283_v9, %s1502_s30  ;;  %s1439_s30 = scalar_lea.hbm %s1438_s29, 8 }
 0x13a   : > { %p1440_p1 = scmp.ne.s32.totalorder %s1438_s29, %s1439_s30  ;;  %p1445_p7 = scmp.lt.s32.totalorder %s1443_s26, %s1439_s30 }
 0x13c   : > { %p1441_p3 = pnand %p1440_p1, %p1603_p4  ;;  %p1446_p8 = por %p1445_p7, %p1444_p12 }
 0x13e   : > { %p1442_p5 = pneg %p1441_p3 }
 0x140   : > { %p1447_p9 = pnand %p1446_p8, %p1442_p5 }
 0x18b   : > { %v289_v10 = vpop.permute.xlu2 %288 }
 0x18c   : > { %360 = vxpose.xlu1.b32.start.end [1/1] (short) (narrow) %v289_v10, 8 }
 0x193   : > { %v291_v11 = vpop.permute.xlu2 %290 }
 0x194   : > { %392 = vxpose.xlu2.b32.start.end [1/1] (short) (narrow) %v291_v11, 8 }
 0x19d   : > { %v1306_v12 = vpop.permute.xlu1 %1305 }
 0x19e   : > { %1310 = vxpose.xlu0.b32.start.end [1/1] (short) (narrow) %v1306_v12, 8 }
 0x22d   : > { %v408_v17 = vpop.trf.xlu2 }
 0x230   : > { %v376_v13 = vpop.trf.xlu1 }
 0x231   : > { %486 = vmatpush.msra.mxu3 %v376_v13 }
 0x232   : > { %1209 = vmatmul.msk.f32.vlgmr.msra.gmra.mxu3 %vm424_vm1, %v281_v8 }
 0x242   : > { %v1311_v14 = vpop.trf.xlu0 }
 0x243   : > { %v1315_v15 = vunpack.i.h.bf16 %v1311_v14  ;;  %v1312_v16 = vunpack.i.l.bf16 %v1311_v14 }
 0x245   : > { %442 = vmatpush.msra.mxu1 %v1315_v15  ;;  %464 = vmatpush.msra.mxu2 %v1312_v16 }
 0x246   : > { %1207 = vmatmul.msk.f32.vlgmr.msra.gmra.mxu1 %vm424_vm1, %v274_v5  ;;  %1208 = vmatmul.msk.f32.vlgmr.msra.gmra.mxu2 %vm424_vm1, %v279_v6 }
 0x247   : > { %508 = vmatpush.msrb.mxu1 %v408_v17  ;;  %v1505_v17 = vmov 1934713408  }
 0x24e   : > { %1210 = vmatmul.msk.f32.vlgmr.msrb.gmra.mxu1 %vm424_vm1, %v283_v9 }
 0x2b5   : > { %v488_v18 = vpop.f32.mrf.mxu3 }
 0x2b6   : > { %v519_v19 = vsel %vm424_vm1, %v488_v18, -inf }
 0x2b7   : > { %520 = vmax.xlane.f32.xlu1 %v519_v19 }
 0x2c3   : > { %v444_v20 = vpop.f32.mrf.mxu1 }
 0x2c4   : > { %v513_v21 = vsel %vm424_vm1, %v444_v20, -inf }
 0x2c5   : > { %514 = vmax.xlane.f32.xlu0 %v513_v21 }
 0x2c9   : > { %v466_v22 = vpop.f32.mrf.mxu2 }
 0x2ca   : > { %v516_v23 = vsel %vm424_vm1, %v466_v22, -inf }
 0x2cb   : > { %517 = vmax.xlane.f32.xlu2 %v516_v23  ;;  %v510_v24 = vpop.f32.mrf.mxu1 }
 0x2cc   : > { %v522_v25 = vsel %vm424_vm1, %v510_v24, -inf }
 0x2cd   : > { %523 = vmax.xlane.f32.xlu0 %v522_v25 }
 0x2d0   : > { %557 = vrot.lane.b32.xlu1 %v274_v5, %s1503_s5 }
 0x2e1   : > { %561 = vrot.lane.b32.xlu0 %v281_v8, %s1503_s5 }
 0x2e3   : > { %559 = vrot.lane.b32.xlu2 %v279_v6, %s1503_s5 }
 0x2eb   : > { %563 = vrot.lane.b32.xlu2 %v283_v9, %s1503_s5  ;;  %v1504_v9 = vmov 1983009808  }
 0x2ec   : > { %v935_v10 = vunpack.c.l.s4 %v1504_v9 }
 0x2ee   : > { %v936_v14 = vunpack.c.0.s8 %v935_v10 }
 0x32a   : > { %v521_v26 = vpop.xlane.xlu1 %520 }
 0x32b   : > { %v527_v29 = vsub.f32 %v488_v18, %v521_v26  ;;  %v959_v18 = vunpack.c.l.s4 %v1505_v17  ;;  %v1057_v17 = vld [vmem:[#allocation7] sm:$0xff] }
 0x32d   : > { %v533_v31 = vmul.f32 1.442695, %v527_v29 }
 0x338   : > { %v515_v27 = vpop.xlane.xlu0 %514 }
 0x339   : > { %v525_v28 = vsub.f32 %v444_v20, %v515_v27 }
 0x33b   : > { %v529_v30 = vmul.f32 1.442695, %v525_v28 }
 0x33d   : > { %1317 = vpow2.f32 %v529_v30 }
 0x33e   : > { %v518_v32 = vpop.xlane.xlu2 %517  ;;  %1319 = vpow2.f32 %v533_v31 }
 0x33f   : > { %v526_v33 = vsub.f32 %v466_v22, %v518_v32  ;;  %v960_v22 = vunpack.c.0.s8 %v959_v18 }
 0x340   : > { %v524_v34 = vpop.xlane.xlu0 %523 }
 0x341   : > { %v531_v35 = vmul.f32 1.442695, %v526_v33  ;;  %v528_v36 = vsub.f32 %v510_v24, %v524_v34 }
 0x342   : > { %v558_v49 = vpop.permute.xlu1 %557 }
 0x343   : > { %v1318_v37 = vpop.eup %1317  ;;  %1321 = vpow2.f32 %v531_v35  ;;  %v535_v38 = vmul.f32 1.442695, %v528_v36 }
 0x344   : > { %v537_v39 = vsel %vm424_vm1, %v1318_v37, 0.0  ;;  %v1320_v40 = vpop.eup %1319 }
 0x345   : > { %1323 = vpow2.f32 %v535_v38  ;;  %538 = vadd.xlane.f32.xlu0 %v537_v39  ;;  %v543_v44 = vsel %vm424_vm1, %v1320_v40, 0.0 }
 0x346   : > { %v560_v46 = vpop.permute.xlu2 %559 }
 0x349   : > { %v1322_v41 = vpop.eup %1321 }
 0x34a   : > { %v540_v42 = vsel %vm424_vm1, %v1322_v41, 0.0 }
 0x34b   : > { %v1324_v43 = vpop.eup %1323  ;;  %541 = vadd.xlane.f32.xlu1 %v540_v42 }
 0x34c   : > { %v546_v45 = vsel %vm424_vm1, %v1324_v43, 0.0 }
 0x34d   : > { %544 = vadd.xlane.f32.xlu0 %v543_v44  ;;  %547 = vadd.xlane.f32.xlu2 %v546_v45 }
 0x34e   : > { %v564_v48 = vpop.permute.xlu2 %563 }
 0x353   : > { %v562_v47 = vpop.permute.xlu0 %561 }
 0x376   : > { %633 = vxpose.xlu0.b32.start.end [1/1] (short) (narrow) %v562_v47, 8  ;;  %601 = vxpose.xlu2.b32.start.end [1/1] (short) (narrow) %v560_v46, 8 }
 0x37e   : > { %665 = vxpose.xlu2.b32.start.end [1/1] (short) (narrow) %v564_v48, 8 }
 0x385   : > { %569 = vxpose.xlu1.b32.start.end [1/1] (short) (narrow) %v558_v49, 8 }
 0x3b8   : > { %v539_v50 = vpop.xlane.xlu0 %538 }
 0x3b9   : > { %1325 = vrcp.f32 %v539_v50 }
 0x3be   : > { %v542_v51 = vpop.xlane.xlu1 %541 }
 0x3bf   : > { %v1326_v52 = vpop.eup %1325  ;;  %1327 = vrcp.f32 %v542_v51 }
 0x3c0   : > { %v545_v53 = vpop.xlane.xlu0 %544  ;;  %v548_v54 = vpop.xlane.xlu2 %547  ;;  %v553_v55 = vmul.f32 %v1326_v52, %v1318_v37 }
 0x3c1   : > { %1329 = vrcp.f32 %v545_v53 }
 0x3c2   : > { %1331 = vrcp.f32 %v548_v54  ;;  %1211 = vmatpush.xpose.msk.msrb.mxu2 %vm424_vm1, %v553_v55 }
 0x3c5   : > { %v1328_v56 = vpop.eup %1327 }
 0x3c6   : > { %v554_v57 = vmul.f32 %v1328_v56, %v1322_v41 }
 0x3c7   : > { %v1330_v58 = vpop.eup %1329 }
 0x3c8   : > { %v1332_v59 = vpop.eup %1331  ;;  %1213 = vmatpush.xpose.msk.msrb.mxu3 %vm424_vm1, %v554_v57  ;;  %v555_v60 = vmul.f32 %v1330_v58, %v1320_v40 }
 0x3c9   : > { %v556_v61 = vmul.f32 %v1332_v59, %v1324_v43 }
 0x3ca   : > { %1215 = vmatpush.xpose.msk.msrb.mxu0 %vm424_vm1, %v555_v60 }
 0x3cb   : > { %1217 = vmatpush.xpose.msk.msra.mxu1 %vm424_vm1, %v556_v61 }
 0x40f   : > { %v617_v62 = vpop.trf.xlu2 }
 0x410   : > { %1214 = vmatmul.msk.f32.vlgmr.msrb.gmra.mxu3 %vm424_vm1, %v617_v62 }
 0x417   : > { %v681_v63 = vpop.trf.xlu2 }
 0x418   : > { %1218 = vmatmul.msk.f32.vlgmr.msra.gmra.mxu1 %vm424_vm1, %v681_v63 }
 0x41a   : > { %v649_v0 = vpop.trf.xlu0 }
 0x41b   : > { %1216 = vmatmul.msk.f32.vlgmr.msrb.gmra.mxu0 %vm424_vm1, %v649_v0 }
 0x429   : > { %v585_v1 = vpop.trf.xlu1 }
 0x42a   : > { %1212 = vmatmul.msk.f32.vlgmr.msrb.gmra.mxu2 %vm424_vm1, %v585_v1 }
 0x493   : > { %v746_v2 = vpop.f32.mrf.mxu3 }
 0x494   : > { %833 = vxpose.xlu1.b32.start.end [1/1] (short) (narrow) %v746_v2, 8 }
 0x495   : > { %v798_v3 = vpop.f32.mrf.mxu1 }
 0x496   : > { %897 = vxpose.xlu0.b32.start.end [1/1] (short) (narrow) %v798_v3, 8 }
 0x498   : > { %v772_v4 = vpop.f32.mrf.mxu0 }
 0x49e   : > { %865 = vxpose.xlu0.b32.start.end [1/1] (short) (narrow) %v772_v4, 8 }
 0x4ad   : > { %v720_v5 = vpop.f32.mrf.mxu2 }
 0x4ae   : > { %801 = vxpose.xlu2.b32.start.end [1/1] (short) (narrow) %v720_v5, 8 }
 0x538   : > { %v849_v7 = vpop.trf.xlu1 }
 0x539   : > { %v944_v11 = vrot.slane %v849_v7, 4 }
 0x53a   : > { %v913_v6 = vpop.trf.xlu0 }
 0x53b   : > { %v942_v8 = vrot.slane %v913_v6, 4  ;;  %v945_v15 = vsel %vm930_vm2, %v913_v6, %v944_v11 }
 0x53c   : > { %v953_v20 = vperm.slane %v945_v15, %v936_v14  ;;  %v1059_v15 = vld [vmem:[#allocation7 + $0x10] sm:$0xff] }
 0x53d   : > { %v943_v12 = vsel %vm930_vm2, %v942_v8, %v849_v7 }
 0x53e   : > { %v949_v19 = vperm.slane %v943_v12, %v936_v14  ;;  %v966_v28 = vrot.slane %v953_v20, 4 }
 0x540   : > { %v954_v25 = vrot.slane %v949_v19, 4 }
 0x542   : > { %v881_v13 = vpop.trf.xlu0 }
 0x543   : > { %v929_v16 = vrot.slane %v881_v13, 4 }
 0x547   : > { %v817_v21 = vpop.trf.xlu2 }
 0x548   : > { %v931_v23 = vsel %vm930_vm2, %v929_v16, %v817_v21  ;;  %v932_v24 = vrot.slane %v817_v21, 4  ;;  %v1058_v16 = vld [vmem:[#allocation7 + $0x8] sm:$0xff] }
 0x549   : > { %v937_v26 = vperm.slane %v931_v23, %v936_v14 }
 0x54a   : > { %v933_v27 = vsel %vm930_vm2, %v881_v13, %v932_v24  ;;  %v1316_v24 = vld [vmem:[%s1737_s3] ss:$0 sm:$0xff] }
 0x54b   : > { %v941_v29 = vperm.slane %v933_v27, %v936_v14  ;;  %v955_v30 = vsel %vm930_vm2, %v954_v25, %v937_v26  ;;  %v956_v31 = vrot.slane %v937_v26, 4 }
 0x54c   : > { %v961_v32 = vperm.slane %v955_v30, %v960_v22 }
 0x54d   : > { %v957_v33 = vsel %vm930_vm2, %v949_v19, %v956_v31  ;;  %v967_v34 = vsel %vm930_vm2, %v966_v28, %v941_v29  ;;  %v968_v35 = vrot.slane %v941_v29, 4 }
 0x54e   : > { %v965_v36 = vperm.slane %v957_v33, %v960_v22  ;;  %v973_v37 = vperm.slane %v967_v34, %v960_v22  ;;  %v978_v40 = vrot.slane %v961_v32, 4 }
 0x54f   : > { %v969_v38 = vsel %vm930_vm2, %v953_v20, %v968_v35 }
 0x550   : > { %v977_v39 = vperm.slane %v969_v38, %v960_v22  ;;  %v980_v41 = vrot.slane %v965_v36, 4  ;;  %v982_v43 = vrot.slane %v973_v37, 4  ;;  %v979_v48 = vsel %vm930_vm2, 0.0, %v978_v40 }
 0x552   : > { %v981_v42 = vsel %vm930_vm2, 0.0, %v980_v41  ;;  %v984_v44 = vrot.slane %v977_v39, 4  ;;  %v986_v45 = vsel %vm930_vm2, %v980_v41, %v961_v32  ;;  %v983_v55 = vsel %vm930_vm2, 0.0, %v982_v43 }
 0x553   : > { %v990_v46 = vperm.slane %v986_v45, %v936_v14  ;;  %v991_v47 = vrot.slane %v981_v42, 4 }
 0x554   : > { %v985_v49 = vsel %vm930_vm2, 0.0, %v984_v44  ;;  %v997_v50 = vsel %vm930_vm2, %v984_v44, %v973_v37 }
 0x555   : > { %v992_v51 = vsel %vm930_vm2, %v991_v47, %v979_v48  ;;  %v1001_v52 = vperm.slane %v997_v50, %v936_v14  ;;  %v1002_v53 = vrot.slane %v985_v49, 4  ;;  %v1010_v54 = vrot.slane %v990_v46, 4 }
 0x556   : > { %v996_v56 = vperm.slane %v992_v51, %v936_v14 }
 0x557   : > { %v1003_v57 = vsel %vm930_vm2, %v1002_v53, %v983_v55  ;;  %v1022_v58 = vrot.slane %v1001_v52, 4 }
 0x558   : > { %v1007_v59 = vperm.slane %v1003_v57, %v936_v14  ;;  %v1011_v60 = vsel %vm930_vm2, %v996_v56, %v1010_v54  ;;  %v1008_v61 = vrot.slane %v996_v56, 4  ;;  %v1060_v14 = vld [vmem:[#allocation7 + $0x18] sm:$0xff] }
 0x559   : > { %v1019_v62 = vperm.slane %v1011_v60, %v960_v22  ;;  %1080 = vmatpush.msra.mxu2 %v1060_v14 }
 0x55a   : > { %v1023_v63 = vsel %vm930_vm2, %v1007_v59, %v1022_v58  ;;  %v1009_v0 = vsel %vm930_vm2, %v1008_v61, %v990_v46  ;;  %v1020_v1 = vrot.slane %v1007_v59, 4 }
 0x55b   : > { %v1031_v2 = vperm.slane %v1023_v63, %v960_v22  ;;  %v1038_v3 = vrot.slane %v1019_v62, 4  ;;  %v1015_v4 = vperm.slane %v1009_v0, %v960_v22  ;;  %1081 = vmatpush.msra.mxu2 %v1059_v15 }
 0x55c   : > { %v1021_v5 = vsel %vm930_vm2, %v1020_v1, %v1001_v52 }
 0x55d   : > { %v1039_v6 = vsel %vm930_vm2, %v1031_v2, %v1038_v3  ;;  %v1036_v7 = vrot.slane %v1031_v2, 4  ;;  %v1027_v8 = vperm.slane %v1021_v5, %v960_v22  ;;  %v1034_v9 = vrot.slane %v1015_v4, 4  ;;  %1082 = vmatpush.msra.mxu2 %v1058_v16 }
 0x55e   : > { %1049 = vrot.lane.b32.xlu1 %v1039_v6, %s1506_s6 }
 0x55f   : > { %v1037_v10 = vsel %vm930_vm2, %v1036_v7, %v1019_v62  ;;  %v1032_v11 = vrot.slane %v1027_v8, 4  ;;  %v1035_v12 = vsel %vm930_vm2, %v1027_v8, %v1034_v9  ;;  %1083 = vmatpush.msra.mxu2 %v1057_v17 }
 0x560   : > { %1045 = vrot.lane.b32.xlu0 %v1037_v10, %s1507_s7  ;;  %1041 = vrot.lane.b32.xlu2 %v1035_v12, %s1508_s9 }
 0x561   : > { %v1033_v13 = vsel %vm930_vm2, %v1032_v11, %v1015_v4 }
 0x5ba   : > { %v1042_v18 = vpop.permute.xlu2 %1041 }
 0x5bb   : > { %v1052_v19 = vsel %vm424_vm1, %v1033_v13, %v1042_v18 }
 0x5d0   : > { %v1050_v21 = vpop.permute.xlu1 %1049 }
 0x5d2   : > { %v1046_v20 = vpop.permute.xlu0 %1045 }
 0x5d3   : > { %v1054_v22 = vsel %vm1053_vm3, %v1052_v19, %v1046_v20 }
 0x5d4   : > { %v1056_v23 = vsel %vm1055_vm4, %v1054_v22, %v1050_v21 }
 0x5d5   : > { %1219 = vmatmul.msk.f32.vlgmr.msra.gmra.mxu2 %vm253_vm0, %v1056_v23 }
 0x658   : > { %v1085_v25 = vpop.f32.mrf.mxu2 }
 0x659   : > { %v1086_v26 = vadd.f32 %v1316_v24, %v1085_v25 }
 0x65b   : > { %1088 = vst.msk [vmem:[%s247_s28] sm:$0xff] %vm253_vm0, %v1086_v26 }
 0x65c   : > { %1450 = shalt.err (!%p1447_p9)
}
 0x65d   : > { %1234 = dma.vmem_to_hbm [thread:$0]  (%p1603_p4), %s1103_s23, 128, %s1105_s13, %s1090_s22  }
 0x65e PF: > { %s1116_s14 = sand.u32 1, %s1481_s15   ;;  %p1745_p10 = scmp.ge.s32.totalorder %s1493_s18, 2 }
 0x65f   : > { %s1117_s10 = scalar_lea.sflag [#allocation4], %s1116_s14 }
 0x660   : > { %p1248_p13 = pnand %p1745_p10, %p1607_p6 }
 0x662   : > { %p1249_p11 = pneg %p1248_p13 }
 0x664   : > { %1476 = dma.done.wait (%p1249_p11), %s1117_s10, 128  }
 0x665   : > { %1478 = vsyncadd (%p1249_p11), %s1117_s10, 4294967168  ;;  %p18_p0 = scmp.ge.s32.totalorder %s1577_s8, 4   ;;  %s1746_s15 = smov %s1485_s16 }
 0x666   : > { %s1747_s16 = smov %s1489_s17  ;;  %s1748_s17 = smov %s1588_s11 }
 0x667   : > { %s1749_s18 = smov %s1577_s8  ;;  %20 = sbr.rel (!%p18_p0) target bundleno = 6 (0x6), region = 89 }
 0x66c   :  { %1123 = vsyncpa [#allocation3], 1 }
 0x66d   :  { %1125 = vsyncpa [#allocation3 + $0x1], 1 }
 0x66e   :  { %1126 = vsyncpa [#allocation6], 1 }
 0x66f   :  { %1127 = vsyncpa [#allocation4], 1 }
 0x670   :  { %1129 = vsyncpa [#allocation4 + $0x1], 1 }

</bundles_post_ra>
